<compile_context>
chip_gen: v5e
topology: v5e:2x2
jax: 0.10.0
libtpu: 0.0.40
codegen_flags: <defaults>
</compile_context>

<pallas_src>
import jax
import jax.numpy as jnp
from jax import lax
from jax.experimental import pallas as pl
from jax.experimental.pallas import tpu as pltpu

_LANES = 128
_ROW_TILE_BYTES = 8 * 1024 * 1024     # per-buffer DMA target when tiling H*W
_BATCH_TILE_BYTES = 4 * 1024 * 1024   # per-buffer target when batching samples
_VMEM_LIMIT_BYTES = 32 * 1024 * 1024  # explicit; fits v5e/v6e (128 MiB) and v7x (64 MiB)


def _make_pool_linear_kernel(rows, tile_rows, mask_tail):
    """Build the tiled global-average-pool + Linear(1,1) kernel.

    Block shapes seen by the kernel:
      x_ref:     (b_tile, tile_rows, 128)  native dtype (widen fused into reduce)
      scale_ref: (1,) f32 SMEM             Linear weight / (H*W)
      bias_ref:  (1,) f32 SMEM             Linear bias
      out_ref:   (b_tile, 1) f32           per-sample outputs
      acc_ref:   (b_tile, 128) f32 VMEM    per-lane partial sums (persist over r)
    """

    def kernel(x_ref, scale_ref, bias_ref, out_ref, acc_ref):
        r = pl.program_id(1)

        @pl.when(r == 0)
        def _init():
            acc_ref[...] = jnp.zeros_like(acc_ref)

        x = x_ref[...]                                   # (b_tile, tile_rows, 128)
        if mask_tail:
            # Non-divisible reduction grid: the last tile carries unspecified
            # rows past `rows`; zero them before accumulating (mandatory for
            # correctness, cheap VPU select).
            limit = rows - r * tile_rows                 # valid rows in this tile
            row_ids = lax.broadcasted_iota(jnp.int32, (tile_rows, _LANES), 0)
            x = jnp.where((row_ids < limit)[None, :, :], x, jnp.zeros((), x.dtype))

        # Fused widen-and-reduce over the row (sublane) axis, f32 accumulation.
        acc_ref[...] += jnp.sum(x, axis=1, dtype=jnp.float32)   # (b_tile, 128)

        @pl.when(r == pl.num_programs(1) - 1)
        def _finalize():
            total = jnp.sum(acc_ref[...], axis=1, keepdims=True)     # (b_tile, 1)
            out_ref[...] = (total * scale_ref[0] + bias_ref[0]).astype(out_ref.dtype)

    return kernel


def unet2_forward(x, weight, bias):
    """x: (N, C, H, W) with C == 1. weight: (1, 1), bias: (1,). Returns (x, out)."""
    n, c, h, w = x.shape
    assert c == 1, "Linear(1, 1) in UNet2 requires C == 1"
    hw = h * w

    itemsize = jnp.dtype(x.dtype).itemsize
    packing = max(1, 4 // itemsize)          # rows packed per sublane (1/2/4)
    sub_mult = 8 * packing                   # sublane-extent multiple for this dtype

    # Lane-dense layout: (N, rows, 128).  The reshape of a contiguous array is
    # free; a pad copy is only made when H*W is not a multiple of 128 (the
    # zero pad does not change the sum; we divide by the true H*W).
    x_flat = x.reshape(n, hw)                # native dtype; no astype copy
    lane_pad = (-hw) % _LANES
    if lane_pad:
        x_flat = jnp.pad(x_flat, ((0, 0), (0, lane_pad)))
    rows = x_flat.shape[1] // _LANES
    x3 = x_flat.reshape(n, rows, _LANES)

    per_sample_bytes = rows * _LANES * itemsize
    if per_sample_bytes <= _ROW_TILE_BYTES:
        # Whole per-sample reduction fits one step; batch samples per step to
        # amortize per-step overhead (keeps out-blocks sublane-aligned).
        tile_rows = rows
        num_r = 1
        b_budget = max(1, _BATCH_TILE_BYTES // per_sample_bytes)
        if b_budget >= n:
            b_tile = n
        elif b_budget >= 8:
            b_tile = (b_budget // 8) * 8
        else:
            b_tile = 1                       # >=512 KiB/sample: DMA already large
    else:
        # Large sample: tile the H*W reduction with ~8 MiB dtype-aware tiles.
        b_tile = 1
        tile_rows = max(
            sub_mult,
            (_ROW_TILE_BYTES // (_LANES * itemsize)) // sub_mult * sub_mult,
        )
        num_r = pl.cdiv(rows, tile_rows)
    mask_tail = (num_r * tile_rows != rows)

    # Scalars ride in SMEM; fold 1/(H*W) into the weight.
    scale = weight.reshape(-1)[:1].astype(jnp.float32) * (1.0 / hw)
    bias1 = bias.reshape(-1)[:1].astype(jnp.float32)

    kernel = _make_pool_linear_kernel(rows, tile_rows, mask_tail)

    out = pl.pallas_call(
        kernel,
        out_shape=jax.ShapeDtypeStruct((n, 1), jnp.float32),
        grid_spec=pltpu.PrefetchScalarGridSpec(
            num_scalar_prefetch=0,
            grid=(pl.cdiv(n, b_tile), num_r),
            in_specs=[
                pl.BlockSpec((b_tile, tile_rows, _LANES), lambda i, r: (i, r, 0)),
                pl.BlockSpec(memory_space=pltpu.SMEM),
                pl.BlockSpec(memory_space=pltpu.SMEM),
            ],
            out_specs=pl.BlockSpec((b_tile, 1), lambda i, r: (i, 0)),
            scratch_shapes=[pltpu.VMEM((b_tile, _LANES), jnp.float32)],
        ),
        compiler_params=pltpu.CompilerParams(
            dimension_semantics=("parallel", "arbitrary"),
            vmem_limit_bytes=_VMEM_LIMIT_BYTES,
        ),
    )(x3, scale, bias1)

    # First return value of UNet2.forward is the untouched input.
    return x, out


if __name__ == "__main__":
    key = jax.random.PRNGKey(0)
    kx, kw, kb, kx2, kx3, kx4 = jax.random.split(key, 6)

    weight = jax.random.normal(kw, (1, 1), dtype=jnp.float32)
    bias = jax.random.normal(kb, (1,), dtype=jnp.float32)

    def ref_fwd(xa):
        return jnp.mean(xa.astype(jnp.float32), axis=(2, 3)).reshape(-1, 1) @ weight.T + bias

    # 1) Small shape consistent with the module (Linear(1,1) forces C == 1):
    #    single-step, batch-tiled path.
    N, C, H, W = 2, 1, 16, 16
    x = jax.random.normal(kx, (N, C, H, W), dtype=jnp.float32)
    x_out, out = unet2_forward(x, weight, bias)
    jax.block_until_ready((x_out, out))
    assert out.shape == (N, 1)
    assert jnp.allclose(out, ref_fwd(x), atol=1e-5, rtol=1e-5)
    assert jnp.array_equal(x_out, x)

    # 2) bf16 input: fused in-kernel widen + batch tiling with larger H*W.
    x2 = jax.random.normal(kx2, (2, 1, 384, 384), dtype=jnp.float32).astype(jnp.bfloat16)
    _, out2 = unet2_forward(x2, weight, bias)
    jax.block_until_ready(out2)
    assert jnp.allclose(out2, ref_fwd(x2), atol=1e-4, rtol=1e-4)

    # 3) Large H*W: multi-tile reduction with a non-divisible grid and the
    #    in-kernel tail-row mask (no wrapper pad copy).
    x3 = jax.random.normal(kx3, (1, 1, 1536, 1536), dtype=jnp.float32)
    _, out3 = unet2_forward(x3, weight, bias)
    jax.block_until_ready(out3)
    assert jnp.allclose(out3, ref_fwd(x3), atol=1e-3, rtol=1e-3)

    # 4) H*W not a multiple of 128: lane-pad fallback path.
    x4 = jax.random.normal(kx4, (3, 1, 10, 10), dtype=jnp.float32)
    _, out4 = unet2_forward(x4, weight, bias)
    jax.block_until_ready(out4)
    assert jnp.allclose(out4, ref_fwd(x4), atol=1e-5, rtol=1e-5)

    print("KERNEL_OK")
</pallas_src>

<mosaic_0001>
module attributes {stable_mosaic.version = 11 : i64} {
  func.func @kernel(%arg0: i32, %arg1: i32, %arg2: memref<2x2x128xf32, #tpu.memory_space<vmem>>, %arg3: memref<1xf32, #tpu.memory_space<smem>>, %arg4: memref<1xf32, #tpu.memory_space<smem>>, %arg5: memref<2x1xf32, #tpu.memory_space<vmem>>, %arg6: memref<2x128xf32, #tpu.memory_space<vmem>>) attributes {dimension_semantics = [#tpu.dimension_semantics<parallel>, #tpu.dimension_semantics<arbitrary>], iteration_bounds = array<i64: 1, 1>, scalar_prefetch = 0 : i64, scratch_operands = 1 : i64, tpu.core_type = #tpu.core_type<tc>, window_params = [{transform_indices = @transform_0, window_bounds = array<i64: 2, 2, 128>}, {transform_indices = @transform_1, window_bounds = array<i64: 1>}, {transform_indices = @transform_2, window_bounds = array<i64: 1>}, {transform_indices = @transform_3, window_bounds = array<i64: 2, 1>}]} {
    %c0_i32 = arith.constant 0 : i32
    %0 = arith.cmpi eq, %arg1, %c0_i32 : i32
    %1 = arith.extui %0 : i1 to i32
    %c0_i32_0 = arith.constant 0 : i32
    %2 = arith.cmpi ne, %1, %c0_i32_0 : i32
    scf.if %2 {
      %cst_9 = arith.constant 0.000000e+00 : f32
      %11 = vector.broadcast %cst_9 : f32 to vector<2x128xf32>
      %c0_10 = arith.constant 0 : index
      %c0_11 = arith.constant 0 : index
      %12 = vector.load %arg6[%c0_10, %c0_11] : memref<2x128xf32, #tpu.memory_space<vmem>>, vector<2x128xf32>
      tpu.vector_store %arg6[%c0_10, %c0_11], %11 {strides = array<i32>} : memref<2x128xf32, #tpu.memory_space<vmem>>, vector<2x128xf32>,
    } else {
    }
    %c0 = arith.constant 0 : index
    %c0_1 = arith.constant 0 : index
    %c0_2 = arith.constant 0 : index
    %3 = vector.load %arg2[%c0, %c0_1, %c0_2] : memref<2x2x128xf32, #tpu.memory_space<vmem>>, vector<2x2x128xf32>
    %c0_3 = arith.constant 0 : index
    %c0_4 = arith.constant 0 : index
    %4 = vector.load %arg6[%c0_3, %c0_4] : memref<2x128xf32, #tpu.memory_space<vmem>>, vector<2x128xf32>
    %cst = arith.constant dense<0.000000e+00> : vector<2x128xf32>
    %5 = vector.multi_reduction <add>, %3, %cst [1] : vector<2x2x128xf32> to vector<2x128xf32>
    %6 = arith.addf %4, %5 : vector<2x128xf32>
    %c0_5 = arith.constant 0 : index
    %c0_6 = arith.constant 0 : index
    %7 = vector.load %arg6[%c0_5, %c0_6] : memref<2x128xf32, #tpu.memory_space<vmem>>, vector<2x128xf32>
    tpu.vector_store %arg6[%c0_5, %c0_6], %6 {strides = array<i32>} : memref<2x128xf32, #tpu.memory_space<vmem>>, vector<2x128xf32>,
    %c0_i32_7 = arith.constant 0 : i32
    %8 = arith.cmpi eq, %arg1, %c0_i32_7 : i32
    %9 = arith.extui %8 : i1 to i32
    %c0_i32_8 = arith.constant 0 : i32
    %10 = arith.cmpi ne, %9, %c0_i32_8 : i32
    scf.if %10 {
      %c0_9 = arith.constant 0 : index
      %c0_10 = arith.constant 0 : index
      %11 = vector.load %arg6[%c0_9, %c0_10] : memref<2x128xf32, #tpu.memory_space<vmem>>, vector<2x128xf32>
      %cst_11 = arith.constant dense<0.000000e+00> : vector<2xf32>
      %12 = vector.multi_reduction <add>, %11, %cst_11 [1] : vector<2x128xf32> to vector<2xf32>
      %13 = vector.shape_cast %12 : vector<2xf32> to vector<2x1xf32>
      %c0_12 = arith.constant 0 : index
      %14 = memref.load %arg3[%c0_12] : memref<1xf32, #tpu.memory_space<smem>>
      %15 = vector.broadcast %14 : f32 to vector<2x1xf32>
      %16 = arith.mulf %13, %15 : vector<2x1xf32>
      %c0_13 = arith.constant 0 : index
      %17 = memref.load %arg4[%c0_13] : memref<1xf32, #tpu.memory_space<smem>>
      %18 = vector.broadcast %17 : f32 to vector<2x1xf32>
      %19 = arith.addf %16, %18 : vector<2x1xf32>
      %c0_14 = arith.constant 0 : index
      %c0_15 = arith.constant 0 : index
      %20 = vector.load %arg5[%c0_14, %c0_15] : memref<2x1xf32, #tpu.memory_space<vmem>>, vector<2x1xf32>
      tpu.vector_store %arg5[%c0_14, %c0_15], %19 {strides = array<i32>} : memref<2x1xf32, #tpu.memory_space<vmem>>, vector<2x1xf32>,
    } else {
    }
    return
  }
  func.func @transform_0(%arg0: i32, %arg1: i32) -> (i32, i32, i32) {
    %c0_i32 = arith.constant 0 : i32
    %c0_i32_0 = arith.constant 0 : i32
    return %arg0, %arg1, %c0_i32 : i32, i32, i32
  }
  func.func @transform_1(%arg0: i32, %arg1: i32) -> i32 {
    %c0_i32 = arith.constant 0 : i32
    %c0_i32_0 = arith.constant 0 : i32
    return %c0_i32 : i32
  }
  func.func @transform_2(%arg0: i32, %arg1: i32) -> i32 {
    %c0_i32 = arith.constant 0 : i32
    %c0_i32_0 = arith.constant 0 : i32
    return %c0_i32 : i32
  }
  func.func @transform_3(%arg0: i32, %arg1: i32) -> (i32, i32) {
    %c0_i32 = arith.constant 0 : i32
    %c0_i32_0 = arith.constant 0 : i32
    return %arg0, %c0_i32 : i32, i32
  }
}

</mosaic_0001>

<bundles_post_ra>
// kernel: tpu_custom_call.1
= control target key start
LH: loop header
LB: loop body
LE: loop exit
PB: predicated region body
PF: predicated region fallthrough
CT: control target
= control target key end

     0   :  { %vm24_vm0 = vcmask 1041408   ;;  %v66_v0 = vmov 0.0   ;;  %vm41_vm1 = vcmask 1041409   ;;  %vm59_vm2 = vcmask 1024   ;;  %s105_s0 = inlined_call_operand.vmem [shape: f32[2,2,128], index: 0, kind: input, shape index: {}]   ;;  %s106_s1 = inlined_call_operand.<no memory space> [shape: f32[1], index: 1, kind: input, shape index: {}]   ;;  %s107_s2 = inlined_call_operand.<no memory space> [shape: f32[1], index: 2, kind: input, shape index: {}]   ;;  %s108_s3 = inlined_call_operand.vmem [shape: f32[2,1], index: 3, kind: output, shape index: {}]  }
   0x1   :  { %20 = vst [vmem:[#allocation2] sm:$0x3] %v66_v0  ;;  %v21_v1 = vld [vmem:[%s105_s0] sm:$0x3]  ;;  %v22_v2 = vld [vmem:[%s105_s0 + $0x2] sm:$0x3]  ;;  %v54_v22 = vstv %s106_s1  ;;  %v57_v24 = vstv %s107_s2 }
   0x2   :  { %v25_v3 = vsel %vm24_vm0, %v21_v1, 0.0  ;;  %v32_v4 = vsel %vm24_vm0, %v22_v2, 0.0 }
   0x3   :  { %v26_v5 = vrot.slane %v25_v3, 4  ;;  %v33_v6 = vrot.slane %v32_v4, 4 }
   0x5   :  { %v27_v7 = vadd.f32 %v26_v5, %v25_v3  ;;  %v34_v8 = vadd.f32 %v33_v6, %v32_v4 }
   0x7   :  { %v28_v9 = vrot.slane %v27_v7, 2  ;;  %v35_v10 = vrot.slane %v34_v8, 2 }
   0x8   :  { %v23_v15 = vld [vmem:[#allocation2] sm:$0x3] }
   0x9   :  { %v29_v11 = vadd.f32 %v28_v9, %v27_v7  ;;  %v36_v12 = vadd.f32 %v35_v10, %v34_v8 }
   0xb   :  { %v30_v13 = vrot.slane %v29_v11, 1  ;;  %v37_v14 = vrot.slane %v36_v12, 1 }
   0xd   :  { %v31_v16 = vadd.f32 %v30_v13, %v29_v11  ;;  %v38_v17 = vadd.f32 %v37_v14, %v36_v12 }
   0xf   :  { %v42_v18 = vsel %vm41_vm1, %v38_v17, %v31_v16 }
  0x10   :  { %v44_v19 = vadd.f32 %v42_v18, %v23_v15 }
  0x12   :  { %45 = vst [vmem:[#allocation2] sm:$0x3] %v44_v19 }
  0x19   :  { %v49_v20 = vld [vmem:[#allocation2] sm:$0x3] }
  0x1a   :  { %v50_v21 = vsel %vm24_vm0, %v49_v20, 0.0 }
  0x1b   :  { %51 = vadd.xlane.f32.xlu0 %v50_v21 }
  0x8e   :  { %v52_v23 = vpop.xlane.xlu0 %51 }
  0x8f   :  { %v55_v25 = vmul.f32 %v54_v22, %v52_v23 }
  0x91   :  { %v58_v26 = vadd.f32 %v57_v24, %v55_v25 }
  0x93   :  { %60 = vst.msk [vmem:[%s108_s3] sm:$0x3] %vm59_vm2, %v58_v26 }

</bundles_post_ra>
